<compile_context>
chip_gen: v7x
topology: tpu7x:2x2x1
jax: 0.10.0
libtpu: 0.0.40
codegen_flags: <defaults>
</compile_context>

<pallas_src>
import functools

import jax
import jax.numpy as jnp
from jax import lax
from jax.experimental import pallas as pl
from jax.experimental.pallas import tpu as pltpu

THRESH = 0.5
MARGIN = 0.1
SCALE_POS = 2.0
SCALE_NEG = 40.0
EPSILON = 1e-5

_MIN_TILE = 16  # sublane granularity that is also bf16-packing friendly


def _round_up(x, m):
    return ((x + m - 1) // m) * m


def _vmem_capacity_bytes():
    try:
        return int(pltpu.get_tpu_info().vmem_capacity_bytes)
    except Exception:
        return 64 << 20  # conservative (v7x per-TensorCore VMEM)


def _ms_loss_kernel(x_col_ref, x_rowT_ref, lbl_col_ref, lbl_row_ref,
                    col_mod_ref, out_ref, sim_ref, *,
                    batch_size, n_real, tile_rows, chunk):
    # MXU: (TILE, D) x (D, Np) -> (TILE, Np), bf16 (or f32) operands, f32 acc.
    sim_ref[...] = lax.dot_general(
        x_col_ref[...], x_rowT_ref[...],
        dimension_numbers=(((1,), (0,)), ((), ())),
        preferred_element_type=jnp.float32)

    lc = lbl_col_ref[...]                                    # (TILE, 1) int32
    row_base = pl.program_id(0) * tile_rows
    row_ids = row_base + lax.broadcasted_iota(jnp.int32, (tile_rows, 1), 0)
    row_valid = row_ids < batch_size                         # kills padded anchors

    n_chunks = sim_ref.shape[1] // chunk
    inf = jnp.float32(jnp.inf)

    def masks_for_chunk(c):
        base = c * chunk
        start = pl.multiple_of(base, chunk)
        s = sim_ref[:, pl.ds(start, chunk)]                  # (TILE, C) f32
        lr = lbl_row_ref[:, pl.ds(start, chunk)]             # (1, C) int32
        cm = col_mod_ref[:, pl.ds(start, chunk)]             # (1, C) int32
        col_ids = base + lax.broadcasted_iota(jnp.int32, (1, chunk), 1)
        col_ok = col_ids < n_real                            # mask padded columns
        neq = lc != lr
        not_diag = row_ids != cm                             # i != (j % batch_size)
        neg_mask = jnp.logical_and(neq, col_ok)
        # pos_pair_ = sim[pos_mask & (sim < 1 - eps)]
        valid_pos = jnp.logical_and(
            jnp.logical_and(jnp.logical_not(neq), not_diag),
            jnp.logical_and(col_ok, s < (1.0 - EPSILON)))
        return s, valid_pos, neg_mask

    # Pass 1: min over valid positives, max over negatives (chunked).
    def pass1(c, carry):
        min_pos, max_neg = carry
        s, valid_pos, neg_mask = masks_for_chunk(c)
        min_pos = jnp.minimum(
            min_pos, jnp.min(jnp.where(valid_pos, s, inf), axis=-1, keepdims=True))
        max_neg = jnp.maximum(
            max_neg, jnp.max(jnp.where(neg_mask, s, -inf), axis=-1, keepdims=True))
        return min_pos, max_neg

    min_pos, max_neg = lax.fori_loop(
        0, n_chunks, pass1,
        (jnp.full((tile_rows, 1), inf, jnp.float32),
         jnp.full((tile_rows, 1), -inf, jnp.float32)),
        unroll=n_chunks <= 8)

    # Pass 2: exp sums over margin-selected pairs (chunked).
    def pass2(c, carry):
        pos_sum, neg_sum = carry
        s, valid_pos, neg_mask = masks_for_chunk(c)
        s_shift = s - THRESH
        # neg_pair = neg_pair_[neg_pair_ + margin > min(pos_pair_)]
        neg_sel = jnp.logical_and(neg_mask, s + MARGIN > min_pos)
        # pos_pair = pos_pair_[pos_pair_ - margin < max(neg_pair_)]
        pos_sel = jnp.logical_and(valid_pos, s - MARGIN < max_neg)
        pos_sum = pos_sum + jnp.sum(
            jnp.exp(jnp.where(pos_sel, -SCALE_POS * s_shift, -inf)),
            axis=-1, keepdims=True)
        neg_sum = neg_sum + jnp.sum(
            jnp.exp(jnp.where(neg_sel, SCALE_NEG * s_shift, -inf)),
            axis=-1, keepdims=True)
        return pos_sum, neg_sum

    pos_sum, neg_sum = lax.fori_loop(
        0, n_chunks, pass2,
        (jnp.zeros((tile_rows, 1), jnp.float32),
         jnp.zeros((tile_rows, 1), jnp.float32)),
        unroll=n_chunks <= 8)

    # "any selected" flags without extra cross-lane reductions.
    has_pos = min_pos < inf
    has_neg = max_neg > -inf
    contrib = jnp.logical_and(
        jnp.logical_and(jnp.logical_and(has_pos, has_neg),
                        jnp.logical_and(pos_sum > 0.0, neg_sum > 0.0)),
        row_valid)

    pos_loss = (1.0 / SCALE_POS) * jnp.log1p(pos_sum)
    neg_loss = (1.0 / SCALE_NEG) * jnp.log1p(neg_sum)
    out_ref[...] = jnp.where(contrib, pos_loss + neg_loss, 0.0)   # (TILE, 1)


def _choose_anchor_tile(bc, np_pad, d, chunk, itemsize):
    """Anchor tile sized from the real VMEM footprint, MXU-aligned, and
    capped so the grid has >= 2 steps when the batch permits (v7x megacore)."""
    cap = _vmem_capacity_bytes()
    budget = int(cap * 0.72)                 # headroom for compiler temporaries
    # Resident, double-buffered column-side inputs (x_rowT + labels + col_mod).
    fixed = 2 * (d * np_pad * itemsize + 2 * np_pad * 4)
    # Per anchor row: sim scratch row + double-buffered x_col row + live
    # (row, chunk) slabs in the two-pass loop + small (row, 1) carries.
    per_row = np_pad * 4 + 2 * d * itemsize + 8 * chunk * 4 + 64
    tbc = max((budget - fixed) // max(per_row, 1), _MIN_TILE)
    # MXU-friendly granularity (use 256-multiples on v6e/v7x if desired).
    if tbc >= 128:
        tbc = (tbc // 128) * 128
    else:
        tbc = (tbc // _MIN_TILE) * _MIN_TILE
    tbc = max(_MIN_TILE, min(tbc, 1024))
    bc_pad = _round_up(bc, _MIN_TILE)
    tbc = min(tbc, bc_pad)
    # Guarantee >= 2 grid steps when the batch is large enough to split.
    if tbc >= bc and bc >= 2 * _MIN_TILE:
        align2 = 128 if bc >= 256 else _MIN_TILE
        tbc = min(tbc, _round_up(-(-bc // 2), align2))
    return max(_MIN_TILE, tbc)


def multi_similarity_loss(inputs_col, targets_col, *, batch_size=None,
                          all_anchor=False, tile_rows=None,
                          matmul_dtype=jnp.bfloat16):
    """JAX/Pallas equivalent of MultiSimilarityLoss.forward.

    inputs_col: (N, D) float embeddings, targets_col: (N,) integer labels.
    Only the first `batch_size` rows act as anchors (matches the PyTorch
    `for i in range(self.batch_size)` loop), so the anchor side is sliced to
    `batch_size` regardless of `all_anchor` — loss-equivalent.
    """
    n, d = inputs_col.shape
    if batch_size is None:
        batch_size = n
    del all_anchor  # equivalent after slicing the anchor rows (see docstring)
    bc = int(batch_size)

    mm_dtype = jnp.dtype(matmul_dtype)
    itemsize = mm_dtype.itemsize

    # Column padding: lane-aligned and divisible by the in-kernel chunk width.
    np_pad = _round_up(n, 128)
    chunk = 512 if np_pad % 512 == 0 else (256 if np_pad % 256 == 0 else 128)

    if tile_rows is None:
        tbc = _choose_anchor_tile(bc, np_pad, d, chunk, itemsize)
    else:
        tbc = max(_MIN_TILE, _round_up(int(tile_rows), _MIN_TILE))
    num_tiles = pl.cdiv(bc, tbc)
    bc_pad = num_tiles * tbc

    x = inputs_col.astype(mm_dtype)

    # Anchor side (tiled over the grid). Padded rows are zero and are fully
    # masked out in-kernel via the `row_ids < batch_size` gate.
    x_col = x[:bc]
    l_col = targets_col[:bc].astype(jnp.int32)
    if bc_pad > bc:
        x_col = jnp.pad(x_col, ((0, bc_pad - bc), (0, 0)))
        l_col = jnp.pad(l_col, (0, bc_pad - bc))
    l_col = l_col.reshape(bc_pad, 1)

    # Column side (resident): pre-transposed to (D, Np) so the MXU contraction
    # is lhs-last / rhs-first (no in-kernel transpose). Padded columns are
    # excluded in-kernel via the `col < n` gate.
    x_rowT = x.T
    l_row = targets_col.astype(jnp.int32).reshape(1, n)
    col_mod = (jnp.arange(n, dtype=jnp.int32) % jnp.int32(bc)).reshape(1, n)
    if np_pad > n:
        x_rowT = jnp.pad(x_rowT, ((0, 0), (0, np_pad - n)))
        l_row = jnp.pad(l_row, ((0, 0), (0, np_pad - n)))
        col_mod = jnp.pad(col_mod, ((0, 0), (0, np_pad - n)), constant_values=-1)

    # VMEM accounting: double-buffered inputs + sim scratch + live chunk slabs.
    resident = 2 * (d * np_pad * itemsize + 2 * np_pad * 4)
    tiled = 2 * (tbc * d * itemsize + 2 * tbc * 4)
    scratch = tbc * np_pad * 4
    live = 8 * tbc * chunk * 4
    cap = _vmem_capacity_bytes()
    vmem_limit = int((resident + tiled + scratch + live) * 1.4) + (2 << 20)
    vmem_limit = max(16 << 20, min(vmem_limit, int(cap * 0.9)))

    kernel = functools.partial(_ms_loss_kernel, batch_size=bc, n_real=n,
                               tile_rows=tbc, chunk=chunk)

    # TODO(synk): mark the three resident inputs pipeline_mode=pl.Buffered(1)
    # (single buffer) once verified on the target Mosaic version; it halves
    # their VMEM footprint.
    # TODO(synk): for N*D too large for x_rowT to stay resident, stream column
    # blocks via manual DMA on top of the in-kernel two-pass chunking.
    row_losses = pl.pallas_call(
        kernel,
        out_shape=jax.ShapeDtypeStruct((bc_pad, 1), jnp.float32),
        grid=(num_tiles,),
        in_specs=[
            pl.BlockSpec((tbc, d), lambda i: (i, 0)),       # anchors (tiled)
            pl.BlockSpec((d, np_pad), lambda i: (0, 0)),    # embeddings^T (resident)
            pl.BlockSpec((tbc, 1), lambda i: (i, 0)),       # anchor labels (tiled)
            pl.BlockSpec((1, np_pad), lambda i: (0, 0)),    # all labels (resident)
            pl.BlockSpec((1, np_pad), lambda i: (0, 0)),    # j % batch_size (resident)
        ],
        out_specs=pl.BlockSpec((tbc, 1), lambda i: (i, 0)),
        scratch_shapes=[pltpu.VMEM((tbc, np_pad), jnp.float32)],
        compiler_params=pltpu.CompilerParams(
            dimension_semantics=("parallel",),
            vmem_limit_bytes=vmem_limit),
    )(x_col, x_rowT, l_col, l_row, col_mod)

    return jnp.sum(row_losses[:bc, 0]) / jnp.float32(bc)


def _reference_loss(x, labels, batch_size):
    """Pure-JAX reference mirroring the PyTorch implementation (f32 matmul)."""
    sim = jnp.matmul(x[:batch_size], x.T, precision=lax.Precision.HIGHEST)
    lc = labels[:batch_size]
    lr = labels
    eq = lc[:, None] == lr[None, :]
    n_ = sim.shape[1]
    diag = (jnp.arange(batch_size)[:, None] % batch_size) == (
        jnp.arange(n_)[None, :] % batch_size)
    pos_mask = eq & ~diag
    neg_mask = ~eq
    total = 0.0
    for i in range(batch_size):
        row = sim[i]
        vp = pos_mask[i] & (row < 1.0 - EPSILON)
        nm = neg_mask[i]
        if not bool(vp.any()) or not bool(nm.any()):
            continue
        min_pos = jnp.min(jnp.where(vp, row, jnp.inf))
        max_neg = jnp.max(jnp.where(nm, row, -jnp.inf))
        ns = nm & (row + MARGIN > min_pos)
        ps = vp & (row - MARGIN < max_neg)
        if not bool(ns.any()) or not bool(ps.any()):
            continue
        pl_ = (1.0 / SCALE_POS) * jnp.log(
            1.0 + jnp.sum(jnp.where(ps, jnp.exp(-SCALE_POS * (row - THRESH)), 0.0)))
        nl_ = (1.0 / SCALE_NEG) * jnp.log(
            1.0 + jnp.sum(jnp.where(ns, jnp.exp(SCALE_NEG * (row - THRESH)), 0.0)))
        total = total + pl_ + nl_
    return jnp.asarray(total / batch_size, dtype=jnp.float32)


if __name__ == "__main__":
    key = jax.random.PRNGKey(0)
    k1, k2 = jax.random.split(key)
    B, D = 32, 64
    x = jax.random.normal(k1, (B, D), dtype=jnp.float32)
    x = x / jnp.linalg.norm(x, axis=-1, keepdims=True)   # unit-norm embeddings
    labels = jax.random.randint(k2, (B,), 0, 4, dtype=jnp.int32)
    # Kernel feeds the MXU bf16 operands; compare against a reference that sees
    # the same bf16-rounded inputs (products are then exact in f32).
    x_q = x.astype(jnp.bfloat16).astype(jnp.float32)

    # Default path: bf16 MXU operands, auto tile (>=2 grid steps -> megacore).
    loss = multi_similarity_loss(x, labels, batch_size=B)
    jax.block_until_ready(loss)
    ref = _reference_loss(x_q, labels, B)
    assert jnp.allclose(loss, ref, rtol=2e-3, atol=1e-5), (loss, ref)

    # f32 MXU path with an explicit tile size (exercises the multi-tile grid).
    loss_f32 = multi_similarity_loss(x, labels, batch_size=B, tile_rows=16,
                                     matmul_dtype=jnp.float32)
    jax.block_until_ready(loss_f32)
    ref_f32 = _reference_loss(x, labels, B)
    assert jnp.allclose(loss_f32, ref_f32, rtol=2e-3, atol=1e-5), (loss_f32, ref_f32)

    # batch_size < N (anchor slice + column-modulo "diagonal" path).
    loss_half = multi_similarity_loss(x, labels, batch_size=16)
    jax.block_until_ready(loss_half)
    ref_half = _reference_loss(x_q, labels, 16)
    assert jnp.allclose(loss_half, ref_half, rtol=2e-3, atol=1e-5), (loss_half, ref_half)

    print("KERNEL_OK")
</pallas_src>

<mosaic_0001>
module attributes {stable_mosaic.version = 11 : i64} {
  func.func @_ms_loss_kernel(%arg0: i32, %arg1: memref<16x64xbf16, #tpu.memory_space<vmem>>, %arg2: memref<64x128xbf16, #tpu.memory_space<vmem>>, %arg3: memref<16x1xi32, #tpu.memory_space<vmem>>, %arg4: memref<1x128xi32, #tpu.memory_space<vmem>>, %arg5: memref<1x128xi32, #tpu.memory_space<vmem>>, %arg6: memref<16x1xf32, #tpu.memory_space<vmem>>, %arg7: memref<16x128xf32, #tpu.memory_space<vmem>>) attributes {dimension_semantics = [#tpu.dimension_semantics<parallel>], iteration_bounds = array<i64: 2>, scalar_prefetch = 0 : i64, scratch_operands = 1 : i64, tpu.core_type = #tpu.core_type<tc>, window_params = [{transform_indices = @transform_0, window_bounds = array<i64: 16, 64>}, {pipeline_mode = #tpu.pipeline_mode<synchronous>, transform_indices = @transform_1, window_bounds = array<i64: 64, 128>}, {transform_indices = @transform_2, window_bounds = array<i64: 16, 1>}, {pipeline_mode = #tpu.pipeline_mode<synchronous>, transform_indices = @transform_3, window_bounds = array<i64: 1, 128>}, {pipeline_mode = #tpu.pipeline_mode<synchronous>, transform_indices = @transform_4, window_bounds = array<i64: 1, 128>}, {transform_indices = @transform_5, window_bounds = array<i64: 16, 1>}]} {
    %c0 = arith.constant 0 : index
    %c0_0 = arith.constant 0 : index
    %0 = vector.load %arg1[%c0, %c0_0] : memref<16x64xbf16, #tpu.memory_space<vmem>>, vector<16x64xbf16>
    %c0_1 = arith.constant 0 : index
    %c0_2 = arith.constant 0 : index
    %1 = vector.load %arg2[%c0_1, %c0_2] : memref<64x128xbf16, #tpu.memory_space<vmem>>, vector<64x128xbf16>
    %cst = arith.constant dense<0.000000e+00> : vector<16x128xf32>
    %2 = tpu.matmul %0, %1, %cst {dimension_numbers = #tpu.dot_dimension_numbers<[1], [0], [0], [1], [0, 0, 1, 1], [], []>} : vector<16x64xbf16>, vector<64x128xbf16>, vector<16x128xf32> -> vector<16x128xf32>
    %c0_3 = arith.constant 0 : index
    %c0_4 = arith.constant 0 : index
    %3 = vector.load %arg7[%c0_3, %c0_4] : memref<16x128xf32, #tpu.memory_space<vmem>>, vector<16x128xf32>
    tpu.vector_store %arg7[%c0_3, %c0_4], %2 {strides = array<i32>} : memref<16x128xf32, #tpu.memory_space<vmem>>, vector<16x128xf32>,
    %c0_5 = arith.constant 0 : index
    %c0_6 = arith.constant 0 : index
    %4 = vector.load %arg3[%c0_5, %c0_6] : memref<16x1xi32, #tpu.memory_space<vmem>>, vector<16x1xi32>
    %c16_i32 = arith.constant 16 : i32
    %5 = arith.muli %arg0, %c16_i32 : i32
    %6 = tpu.iota {dimensions = array<i32: 0>} : vector<16x1xi32>
    %7 = vector.broadcast %5 : i32 to vector<16x1xi32>
    %8 = arith.addi %7, %6 : vector<16x1xi32>
    %c32_i32 = arith.constant 32 : i32
    %9 = vector.broadcast %c32_i32 : i32 to vector<16x1xi32>
    %10 = arith.cmpi slt, %8, %9 : vector<16x1xi32>
    %cst_7 = arith.constant 0x7F800000 : f32
    %11 = vector.broadcast %cst_7 : f32 to vector<16x1xf32>
    %cst_8 = arith.constant 0.000000e+00 : f32
    %cst_9 = arith.constant 0x7F800000 : f32
    %12 = arith.subf %cst_8, %cst_9 : f32
    %13 = vector.broadcast %12 : f32 to vector<16x1xf32>
    %cst_10 = arith.constant 0x7F800000 : f32
    %c0_i32 = arith.constant 0 : i32
    %c128_i32 = arith.constant 128 : i32
    %14 = arith.muli %c0_i32, %c128_i32 : i32
    %15 = tpu.assume_multiple %14, 128 : i32
    %c0_11 = arith.constant 0 : index
    %16 = arith.index_cast %15 : i32 to index
    %17 = vector.load %arg7[%c0_11, %16] : memref<16x128xf32, #tpu.memory_space<vmem>>, vector<16x128xf32>
    %c0_12 = arith.constant 0 : index
    %18 = arith.index_cast %15 : i32 to index
    %19 = vector.load %arg4[%c0_12, %18] : memref<1x128xi32, #tpu.memory_space<vmem>>, vector<1x128xi32>
    %c0_13 = arith.constant 0 : index
    %20 = arith.index_cast %15 : i32 to index
    %21 = vector.load %arg5[%c0_13, %20] : memref<1x128xi32, #tpu.memory_space<vmem>>, vector<1x128xi32>
    %22 = tpu.iota {dimensions = array<i32: 1>} : vector<1x128xi32>
    %23 = vector.broadcast %14 : i32 to vector<1x128xi32>
    %24 = arith.addi %23, %22 : vector<1x128xi32>
    %c32_i32_14 = arith.constant 32 : i32
    %25 = vector.broadcast %c32_i32_14 : i32 to vector<1x128xi32>
    %26 = arith.cmpi slt, %24, %25 : vector<1x128xi32>
    %27 = vector.broadcast %4 : vector<16x1xi32> to vector<16x128xi32>
    %28 = vector.broadcast %19 : vector<1x128xi32> to vector<16x128xi32>
    %29 = arith.cmpi ne, %27, %28 : vector<16x128xi32>
    %30 = vector.broadcast %8 : vector<16x1xi32> to vector<16x128xi32>
    %31 = vector.broadcast %21 : vector<1x128xi32> to vector<16x128xi32>
    %32 = arith.cmpi ne, %30, %31 : vector<16x128xi32>
    %33 = vector.broadcast %26 : vector<1x128xi1> to vector<16x128xi1>
    %34 = arith.andi %29, %33 : vector<16x128xi1>
    %cst_15 = arith.constant dense<true> : vector<16x128xi1>
    %35 = arith.xori %29, %cst_15 : vector<16x128xi1>
    %36 = arith.andi %35, %32 : vector<16x128xi1>
    %cst_16 = arith.constant 0.999989986 : f32
    %37 = vector.broadcast %cst_16 : f32 to vector<16x128xf32>
    %38 = arith.cmpf olt, %17, %37 : vector<16x128xf32>
    %39 = vector.broadcast %26 : vector<1x128xi1> to vector<16x128xi1>
    %40 = arith.andi %39, %38 : vector<16x128xi1>
    %41 = arith.andi %36, %40 : vector<16x128xi1>
    %42 = vector.broadcast %cst_10 : f32 to vector<16x128xf32>
    %43 = arith.select %41, %17, %42 : vector<16x128xi1>, vector<16x128xf32>
    %cst_17 = arith.constant dense<0x7F800000> : vector<16xf32>
    %44 = vector.multi_reduction <minimumf>, %43, %cst_17 [1] : vector<16x128xf32> to vector<16xf32>
    %45 = vector.shape_cast %44 : vector<16xf32> to vector<16x1xf32>
    %46 = arith.minimumf %11, %45 : vector<16x1xf32>
    %cst_18 = arith.constant 0.000000e+00 : f32
    %47 = arith.subf %cst_18, %cst_10 : f32
    %48 = vector.broadcast %47 : f32 to vector<16x128xf32>
    %49 = arith.select %34, %17, %48 : vector<16x128xi1>, vector<16x128xf32>
    %cst_19 = arith.constant dense<0xFF800000> : vector<16xf32>
    %50 = vector.multi_reduction <maximumf>, %49, %cst_19 [1] : vector<16x128xf32> to vector<16xf32>
    %51 = vector.shape_cast %50 : vector<16xf32> to vector<16x1xf32>
    %52 = arith.maximumf %13, %51 : vector<16x1xf32>
    %c1_i32 = arith.constant 1 : i32
    %cst_20 = arith.constant 0.000000e+00 : f32
    %53 = vector.broadcast %cst_20 : f32 to vector<16x1xf32>
    %cst_21 = arith.constant 0.000000e+00 : f32
    %54 = vector.broadcast %cst_21 : f32 to vector<16x1xf32>
    %cst_22 = arith.constant 0x7F800000 : f32
    %c0_i32_23 = arith.constant 0 : i32
    %c128_i32_24 = arith.constant 128 : i32
    %55 = arith.muli %c0_i32_23, %c128_i32_24 : i32
    %56 = tpu.assume_multiple %55, 128 : i32
    %c0_25 = arith.constant 0 : index
    %57 = arith.index_cast %56 : i32 to index
    %58 = vector.load %arg7[%c0_25, %57] : memref<16x128xf32, #tpu.memory_space<vmem>>, vector<16x128xf32>
    %c0_26 = arith.constant 0 : index
    %59 = arith.index_cast %56 : i32 to index
    %60 = vector.load %arg4[%c0_26, %59] : memref<1x128xi32, #tpu.memory_space<vmem>>, vector<1x128xi32>
    %c0_27 = arith.constant 0 : index
    %61 = arith.index_cast %56 : i32 to index
    %62 = vector.load %arg5[%c0_27, %61] : memref<1x128xi32, #tpu.memory_space<vmem>>, vector<1x128xi32>
    %63 = tpu.iota {dimensions = array<i32: 1>} : vector<1x128xi32>
    %64 = vector.broadcast %55 : i32 to vector<1x128xi32>
    %65 = arith.addi %64, %63 : vector<1x128xi32>
    %c32_i32_28 = arith.constant 32 : i32
    %66 = vector.broadcast %c32_i32_28 : i32 to vector<1x128xi32>
    %67 = arith.cmpi slt, %65, %66 : vector<1x128xi32>
    %68 = vector.broadcast %4 : vector<16x1xi32> to vector<16x128xi32>
    %69 = vector.broadcast %60 : vector<1x128xi32> to vector<16x128xi32>
    %70 = arith.cmpi ne, %68, %69 : vector<16x128xi32>
    %71 = vector.broadcast %8 : vector<16x1xi32> to vector<16x128xi32>
    %72 = vector.broadcast %62 : vector<1x128xi32> to vector<16x128xi32>
    %73 = arith.cmpi ne, %71, %72 : vector<16x128xi32>
    %74 = vector.broadcast %67 : vector<1x128xi1> to vector<16x128xi1>
    %75 = arith.andi %70, %74 : vector<16x128xi1>
    %cst_29 = arith.constant dense<true> : vector<16x128xi1>
    %76 = arith.xori %70, %cst_29 : vector<16x128xi1>
    %77 = arith.andi %76, %73 : vector<16x128xi1>
    %cst_30 = arith.constant 0.999989986 : f32
    %78 = vector.broadcast %cst_30 : f32 to vector<16x128xf32>
    %79 = arith.cmpf olt, %58, %78 : vector<16x128xf32>
    %80 = vector.broadcast %67 : vector<1x128xi1> to vector<16x128xi1>
    %81 = arith.andi %80, %79 : vector<16x128xi1>
    %82 = arith.andi %77, %81 : vector<16x128xi1>
    %cst_31 = arith.constant 5.000000e-01 : f32
    %83 = vector.broadcast %cst_31 : f32 to vector<16x128xf32>
    %84 = arith.subf %58, %83 : vector<16x128xf32>
    %cst_32 = arith.constant 1.000000e-01 : f32
    %85 = vector.broadcast %cst_32 : f32 to vector<16x128xf32>
    %86 = arith.addf %58, %85 : vector<16x128xf32>
    %87 = vector.broadcast %46 : vector<16x1xf32> to vector<16x128xf32>
    %88 = arith.cmpf ogt, %86, %87 : vector<16x128xf32>
    %89 = arith.andi %75, %88 : vector<16x128xi1>
    %cst_33 = arith.constant 1.000000e-01 : f32
    %90 = vector.broadcast %cst_33 : f32 to vector<16x128xf32>
    %91 = arith.subf %58, %90 : vector<16x128xf32>
    %92 = vector.broadcast %52 : vector<16x1xf32> to vector<16x128xf32>
    %93 = arith.cmpf olt, %91, %92 : vector<16x128xf32>
    %94 = arith.andi %82, %93 : vector<16x128xi1>
    %cst_34 = arith.constant -2.000000e+00 : f32
    %95 = vector.broadcast %cst_34 : f32 to vector<16x128xf32>
    %96 = arith.mulf %95, %84 : vector<16x128xf32>
    %cst_35 = arith.constant 0.000000e+00 : f32
    %97 = arith.subf %cst_35, %cst_22 : f32
    %98 = vector.broadcast %97 : f32 to vector<16x128xf32>
    %99 = arith.select %94, %96, %98 : vector<16x128xi1>, vector<16x128xf32>
    %100 = math.exp %99 : vector<16x128xf32>
    %cst_36 = arith.constant dense<0.000000e+00> : vector<16xf32>
    %101 = vector.multi_reduction <add>, %100, %cst_36 [1] : vector<16x128xf32> to vector<16xf32>
    %102 = vector.shape_cast %101 : vector<16xf32> to vector<16x1xf32>
    %103 = arith.addf %53, %102 : vector<16x1xf32>
    %cst_37 = arith.constant 4.000000e+01 : f32
    %104 = vector.broadcast %cst_37 : f32 to vector<16x128xf32>
    %105 = arith.mulf %104, %84 : vector<16x128xf32>
    %cst_38 = arith.constant 0.000000e+00 : f32
    %106 = arith.subf %cst_38, %cst_22 : f32
    %107 = vector.broadcast %106 : f32 to vector<16x128xf32>
    %108 = arith.select %89, %105, %107 : vector<16x128xi1>, vector<16x128xf32>
    %109 = math.exp %108 : vector<16x128xf32>
    %cst_39 = arith.constant dense<0.000000e+00> : vector<16xf32>
    %110 = vector.multi_reduction <add>, %109, %cst_39 [1] : vector<16x128xf32> to vector<16xf32>
    %111 = vector.shape_cast %110 : vector<16xf32> to vector<16x1xf32>
    %112 = arith.addf %54, %111 : vector<16x1xf32>
    %c1_i32_40 = arith.constant 1 : i32
    %cst_41 = arith.constant 0x7F800000 : f32
    %113 = vector.broadcast %cst_41 : f32 to vector<16x1xf32>
    %114 = arith.cmpf olt, %46, %113 : vector<16x1xf32>
    %cst_42 = arith.constant 0.000000e+00 : f32
    %cst_43 = arith.constant 0x7F800000 : f32
    %115 = arith.subf %cst_42, %cst_43 : f32
    %116 = vector.broadcast %115 : f32 to vector<16x1xf32>
    %117 = arith.cmpf ogt, %52, %116 : vector<16x1xf32>
    %118 = arith.andi %114, %117 : vector<16x1xi1>
    %cst_44 = arith.constant 0.000000e+00 : f32
    %119 = vector.broadcast %cst_44 : f32 to vector<16x1xf32>
    %120 = arith.cmpf ogt, %103, %119 : vector<16x1xf32>
    %cst_45 = arith.constant 0.000000e+00 : f32
    %121 = vector.broadcast %cst_45 : f32 to vector<16x1xf32>
    %122 = arith.cmpf ogt, %112, %121 : vector<16x1xf32>
    %123 = arith.andi %120, %122 : vector<16x1xi1>
    %124 = arith.andi %118, %123 : vector<16x1xi1>
    %125 = arith.andi %124, %10 : vector<16x1xi1>
    %126 = math.log1p %103 : vector<16x1xf32>
    %cst_46 = arith.constant 5.000000e-01 : f32
    %127 = vector.broadcast %cst_46 : f32 to vector<16x1xf32>
    %128 = arith.mulf %127, %126 : vector<16x1xf32>
    %129 = math.log1p %112 : vector<16x1xf32>
    %cst_47 = arith.constant 2.500000e-02 : f32
    %130 = vector.broadcast %cst_47 : f32 to vector<16x1xf32>
    %131 = arith.mulf %130, %129 : vector<16x1xf32>
    %132 = arith.addf %128, %131 : vector<16x1xf32>
    %cst_48 = arith.constant 0.000000e+00 : f32
    %133 = vector.broadcast %cst_48 : f32 to vector<16x1xf32>
    %134 = arith.select %125, %132, %133 : vector<16x1xi1>, vector<16x1xf32>
    %c0_49 = arith.constant 0 : index
    %c0_50 = arith.constant 0 : index
    %135 = vector.load %arg6[%c0_49, %c0_50] : memref<16x1xf32, #tpu.memory_space<vmem>>, vector<16x1xf32>
    tpu.vector_store %arg6[%c0_49, %c0_50], %134 {strides = array<i32>} : memref<16x1xf32, #tpu.memory_space<vmem>>, vector<16x1xf32>,
    return
  }
  func.func @transform_0(%arg0: i32) -> (i32, i32) {
    %c0_i32 = arith.constant 0 : i32
    %c0_i32_0 = arith.constant 0 : i32
    return %arg0, %c0_i32 : i32, i32
  }
  func.func @transform_1(%arg0: i32) -> (i32, i32) {
    %c0_i32 = arith.constant 0 : i32
    %c0_i32_0 = arith.constant 0 : i32
    %c0_i32_1 = arith.constant 0 : i32
    return %c0_i32, %c0_i32_0 : i32, i32
  }
  func.func @transform_2(%arg0: i32) -> (i32, i32) {
    %c0_i32 = arith.constant 0 : i32
    %c0_i32_0 = arith.constant 0 : i32
    return %arg0, %c0_i32 : i32, i32
  }
  func.func @transform_3(%arg0: i32) -> (i32, i32) {
    %c0_i32 = arith.constant 0 : i32
    %c0_i32_0 = arith.constant 0 : i32
    %c0_i32_1 = arith.constant 0 : i32
    return %c0_i32, %c0_i32_0 : i32, i32
  }
  func.func @transform_4(%arg0: i32) -> (i32, i32) {
    %c0_i32 = arith.constant 0 : i32
    %c0_i32_0 = arith.constant 0 : i32
    %c0_i32_1 = arith.constant 0 : i32
    return %c0_i32, %c0_i32_0 : i32, i32
  }
  func.func @transform_5(%arg0: i32) -> (i32, i32) {
    %c0_i32 = arith.constant 0 : i32
    %c0_i32_0 = arith.constant 0 : i32
    return %arg0, %c0_i32 : i32, i32
  }
}

</mosaic_0001>

<bundles_post_ra>
// kernel: tpu_custom_call.1
= control target key start
LH: loop header
LB: loop body
LE: loop exit
PB: predicated region body
PF: predicated region fallthrough
CT: control target
= control target key end

     0   :  { %10 = vsyncpa [#allocation4], 0  ;;  %s1049_s0 = inlined_call_operand.hbm [shape: bf16[32,64], index: 0, kind: input, shape index: {}]   ;;  %s1050_s1 = inlined_call_operand.vmem [shape: bf16[64,128], index: 1, kind: input, shape index: {}]   ;;  %s1051_s2 = inlined_call_operand.vmem [shape: s32[32,1], index: 2, kind: input, shape index: {}]   ;;  %s1052_s3 = inlined_call_operand.vmem [shape: s32[1,128], index: 3, kind: input, shape index: {}]   ;;  %s1053_s4 = inlined_call_operand.vmem [shape: s32[1,128], index: 4, kind: input, shape index: {}]   ;;  %s1054_s5 = inlined_call_operand.vmem [shape: f32[32,1], index: 5, kind: output, shape index: {}]  }
   0x1   :  { %12 = vsyncpa [#allocation4 + $0x1], 0  ;;  %s818_s18 = smov 0   ;;  %s820_s19 = smov 0  }
   0x2   :  { %s822_s20 = smov 0   ;;  %s824_s21 = smov 0  }
   0x3 LB: > { %s837_s22 = sadd.s32 4294967295, %s779_s21   ;;  %s840_s23 = sadd.s32 1, %s779_s21   ;;  %s779_s21 = sphi %s824_s21, %s1079_s21   ;;  %s775_s20 = sphi %s822_s20, %s1078_s20   ;;  %s771_s19 = sphi %s820_s19, %s1077_s19   ;;  %s767_s18 = sphi %s818_s18, %s1076_s18  }
   0x4   : > { %s22_s24 = ssub.s32 %s779_s21, %s840_s23  ;;  %s25_s25 = sadd.s32 1, %s775_s20 }
   0x5   : > { %p23_p0 = scmp.eq.s32.totalorder %s22_s24, 0  ;;  %p32_p1 = scmp.ne.s32.totalorder %s775_s20, %s771_s19 }
   0x6   : > { %p33_p2 = scmp.eq.s32.totalorder %s779_s21, 0  ;;  %p38_p3 = scmp.ne.s32.totalorder %s771_s19, %s767_s18 }
   0x7   : > { %s850_s26 = scalar_select %p23_p0, %s775_s20, %s25_s25  }
   0x8   : > { %p34_p4 = por %p33_p2, %p32_p1  ;;  %p39_p5 = scmp.eq.s32.totalorder %s837_s22, 0 }
   0x9   : > { %p654_p6 = scmp.lt.s32.totalorder %s779_s21, 2  ;;  %s186_s28 = sand.u32 1, %s775_s20  }
   0xa   : > { %p854_p7 = por %p39_p5, %p38_p3  ;;  %s606_s29 = sshll.u32 %s186_s28, 3 }
   0xb   : > { %s630_s30 = sshll.u32 %s779_s21, 7  ;;  %s190_s9 = scalar_lea.vmem [#allocation3], %s606_s29 }
   0xc   : > { %s863_s8 = scalar_lea.hbm %s1049_s0, %s630_s30  ;;  %s197_s10 = sshll.u32 %s190_s9, 4  ;;  %s865_s10 = int_to_ptr.vmem [resolvable:$true] %s197_s10 }
   0xd   : > { %p867_p8 = pnand %p654_p6, %p34_p4  ;;  %s872_s12 = scalar_lea.sflag [#allocation4], %s186_s28 }
   0xe   : > { %s715_s13 = scalar_lea.hbm %s863_s8, 128  ;;  %s720_s16 = scalar_lea.hbm %s1049_s0, 256 }
   0xf   : > { %p716_p10 = scmp.ne.s32.totalorder %s863_s8, %s715_s13  ;;  %p717_p11 = pneg %p867_p8 }
  0x10   : > { %p721_p0 = scmp.lt.u32.totalorder %s863_s8, %s1049_s0  ;;  %p722_p1 = scmp.lt.u32.totalorder %s720_s16, %s715_s13 }
  0x11   : > { %p718_p12 = pnand %p717_p11, %p716_p10  ;;  %p724_p3 = scmp.lt.u32.totalorder %s715_s13, %s863_s8 }
  0x12   : > { %p723_p2 = por %p722_p1, %p721_p0 }
  0x13   : > { %p719_p13 = pneg %p718_p12 }
  0x14   : > { %p725_p4 = por %p724_p3, %p723_p2 }
  0x16   : > { %p726_p5 = pnand %p725_p4, %p719_p13 }
  0x18   : > { %729 = shalt.err (!%p726_p5)
}
  0x19   : > { %s730_s24 = scalar_lea.vmem %s865_s10, 128  ;;  %s781_s25 = smov [#allocation3]  }
  0x1a   : > { %p731_p6 = scmp.ne.s32.totalorder %s865_s10, %s730_s24  ;;  %s735_s28 = sshll.u32 %s781_s25, 4  ;;  %s736_s28 = int_to_ptr.vmem [resolvable:$false] %s735_s28 }
  0x1b   : > { %s737_s29 = scalar_lea.vmem %s736_s28, 256  ;;  %p738_p9 = scmp.lt.s32.totalorder %s865_s10, %s736_s28 }
  0x1c   : > { %p733_p10 = pnand %p731_p6, %p717_p11  ;;  %p739_p0 = scmp.lt.s32.totalorder %s737_s29, %s730_s24 }
  0x1e   : > { %p734_p12 = pneg %p733_p10  ;;  %p740_p1 = por %p739_p0, %p738_p9 }
  0x20   : > { %p741_p2 = pnand %p740_p1, %p734_p12 }
  0x22   : > { %744 = shalt.err (!%p741_p2)
}
  0x23   : > { %s782_s30 = smov 64   ;;  %s783_s6 = smov 4  }
  0x24   : > { %653 = dma.hbm_to_vmem [thread:$0]  (!%p867_p8), %s863_s8, 128, %s865_s10, %s872_s12, %s782_s30, %s782_s30, %s783_s6  }
  0x25   : > { %p214_p11 = scmp.lt.s32.totalorder %s779_s21, 3  ;;  %p1057_p13 = scmp.ge.s32.totalorder %s779_s21, 1 }
  0x27   : > { %p215_p3 = pnand %p1057_p13, %p214_p11 }
  0x28   : > { %s220_s7 = sand.u32 (!%p215_p3), 1, %s771_s19  }
  0x29   : > { %218 = sbr.rel (%p215_p3) target bundleno = 617 (0x269), region = 40  ;;  %s904_s9 = sshll.u32 (!%p215_p3), %s220_s7, 3 }
  0x2a   : > { %s221_s13 = scalar_lea.sflag (!%p215_p3), [#allocation4], %s220_s7  ;;  %s224_s14 = scalar_lea.vmem (!%p215_p3), [#allocation3], %s904_s9 }
  0x30   : > { %762 = dma.done.wait (%p854_p7), %s221_s13, 128  }
  0x31   : > { %764 = vsyncadd (%p854_p7), %s221_s13, 4294967168  ;;  %s611_s11 = sshll.u32 %s837_s22, 1  ;;  %v784_v0 = vmov 0.0   ;;  %vm785_vm0 = vmmov 0   ;;  %v786_v1 = vmov 0   ;;  %v694_v2 = vld [vmem:[%s1050_s1] sm:$0xff]   ;;  %v359_v9 = vlaneseq }
  0x32   : > { %636 = vmatprep.subr.bf16.mxu0 %v784_v0  ;;  %644 = vmatprep.mubr.msk.bf16.mxu0 %vm785_vm0, %v784_v0  ;;  %p258_p8 = scmp.lt.s32.totalorder %s611_s11, 3  ;;  %v695_v3 = vld [vmem:[%s1050_s1 + $0x8] sm:$0xff]   ;;  %v696_v5 = vld [vmem:[%s1050_s1 + $0x10] sm:$0xff]   ;;  %v697_v7 = vld [vmem:[%s1050_s1 + $0x18] sm:$0xff]   ;;  %vm309_vm1 = vcmask 523264   ;;  %s621_s29 = sshll.u32 %s837_s22, 4 }
  0x33   : > { %693 = vset.pattern.permute.xlu0 %v786_v1  ;;  %637 = vmatpush3.bf16.msra.mxu0 %v694_v2  ;;  %v698_v8 = vld [vmem:[%s224_s14] sm:$0xff]   ;;  %v360_v11 = vshrl.u32 %v359_v9, 7  ;;  %v372_v13 = vand.u32 127, %v359_v9  ;;  %v362_v14 = vstv %s621_s29  ;;  %vm787_vm5 = vmmov 1  }
  0x34   : > { %s1081_s11 = smov (!%p258_p8, %s611_s11), 3  ;;  %638 = vmatprep.subr.bf16.mxu0 %v784_v0  ;;  %v622_v12 = vld [vmem:[%s1052_s3] ss:$0 sm:$0xff] }
  0x35   : > { %s612_s21 = sshll.u32 %s1081_s11, 3  ;;  %v361_v15 = vadd.s32 8, %v360_v11  ;;  %v936_v17 = vadd.s32 %v362_v14, %v360_v11  ;;  %vm373_vm3 = vcmp.lt.s32.totalorder %v372_v13, 32  ;;  %v623_v18 = vld [vmem:[%s1053_s4] ss:$0 sm:$0xff] }
  0x36   : > { %s261_s17 = scalar_lea.vmem %s1051_s2, %s612_s21  ;;  %s267_s14 = scalar_lea.vmem %s1054_s5, %s612_s21 }
  0x37   : > { %v356_v4 = vld [vmem:[%s261_s17] sm:$0xff]  ;;  %639 = vmatpush3.bf16.msra.mxu0 %v695_v3  ;;  %v357_v6 = vld [vmem:[%s261_s17 + $0x8] sm:$0xff]  ;;  %v941_v19 = vadd.s32 %v362_v14, %v361_v15  ;;  %vm390_vm8 = vcmp.ne.s32.totalorder %v936_v17, %v623_v18 }
  0x38   : > { %375 = vperm.xlu0 %693, %v356_v4   ;;  %640 = vmatprep.subr.bf16.mxu0 %v784_v0 }
  0x39   : > { %vm391_vm10 = vcmp.ne.s32.totalorder %v941_v19, %v623_v18 }
  0x3b   : > { %641 = vmatpush3.bf16.msra.mxu0 %v696_v5 }
  0x3c   : > { %378 = vperm.xlu0 %693, %v357_v6   ;;  %642 = vmatprep.subr.bf16.mxu0 %v784_v0 }
  0x3f   : > { %643 = vmatpush3.bf16.msra.mxu0 %v697_v7 }
  0x42   : > { %645 = vmatmul.mubr.msk.bf16.vlgmr.msra.gmra.mrb[0].mxu0 %vm309_vm1, %v698_v8 }
  0xb7   : > { %v376_v10 = vpop.permute.xlu0 %375 }
  0xb8   : > { %vm384_vm2 = vcmp.ne.s32.totalorder %v376_v10, %v622_v12 }
  0xb9   : > { %vm396_vm6 = vmxor %vm384_vm2, %vm787_vm5 }
  0xba   : > { %vm944_vm7 = vmand %vm384_vm2, %vm373_vm3 }
  0xbb   : > { %v379_v16 = vpop.permute.xlu0 %378  ;;  %vm951_vm11 = vmand %vm396_vm6, %vm390_vm8 }
  0xbc   : > { %vm385_vm4 = vcmp.ne.s32.totalorder %v379_v16, %v622_v12 }
  0xbd   : > { %vm397_vm9 = vmxor %vm385_vm4, %vm787_vm5 }
  0xbe   : > { %vm957_vm13 = vmand %vm397_vm9, %vm391_vm10 }
  0xbf   : > { %vm991_vm5 = vmand %vm385_vm4, %vm373_vm3 }
 0x115   : > { %v347_v21 = vpop.f32.mrb[0].mxu0 }
 0x116   : > { %v646_v23 = vpop.f32.mrb[1].mxu0  ;;  %v412_v24 = vsel %vm944_vm7, %v347_v21, -inf  ;;  %vm400_vm12 = vcmp.lt.f32.partialorder %v347_v21, 0.99999  ;;  %v624_v34 = vadd.f32 -0.5, %v347_v21 }
 0x117   : > { %414 = vmax.xlane.f32.xlu1 %v412_v24  ;;  %v350_v26 = vpop.f32.mrb[2].mxu0  ;;  %vm962_vm14 = vmand %vm373_vm3, %vm400_vm12  ;;  %v626_v35 = vadd.f32 -0.1, %v347_v21  ;;  %v420_v39 = vadd.f32 0.1, %v347_v21 }
 0x118   : > { %v647_v28 = vpop.f32.mrb[3].mxu0  ;;  %vm404_vm15 = vmand %vm951_vm11, %vm962_vm14  ;;  %vm401_vm0 = vcmp.lt.f32.partialorder %v350_v26, 0.99999  ;;  %v413_v33 = vsel %vm991_vm5, %v350_v26, -inf  ;;  %v432_v37 = vmul.f32 -2.0, %v624_v34  ;;  %v625_v42 = vadd.f32 -0.5, %v350_v26 }
 0x119   : > { %v406_v29 = vsel %vm404_vm15, %v347_v21, inf  ;;  %vm976_vm1 = vmand %vm373_vm3, %vm401_vm0  ;;  %v421_v45 = vadd.f32 0.1, %v350_v26  ;;  %v627_v46 = vadd.f32 -0.1, %v350_v26  ;;  %v446_v48 = vmul.f32 40.0, %v624_v34 }
 0x11a   : > { %vm405_vm2 = vmand %vm957_vm13, %vm976_vm1  ;;  %v433_v49 = vmul.f32 -2.0, %v625_v42  ;;  %v447_v53 = vmul.f32 40.0, %v625_v42 }
 0x11b   : > { %408 = vmin.xlane.f32.xlu1 %v406_v29  ;;  %v407_v31 = vsel %vm405_vm2, %v350_v26, inf }
 0x11c   : > { %410 = vmin.xlane.f32.xlu0 %v407_v31 }
 0x11f   : > { %416 = vmax.xlane.f32.xlu1 %v413_v33 }
 0x1a4   : > { %v415_v36 = vpop.xlane.xlu1 %414 }
 0x1a5   : > { %vm428_vm6 = vcmp.lt.f32.partialorder %v626_v35, %v415_v36  ;;  %vm462_vm9 = vcmp.gt.f32.partialorder %v415_v36, -inf }
 0x1a6   : > { %vm430_vm8 = vmand %vm404_vm15, %vm428_vm6 }
 0x1a7   : > { %v434_v38 = vsel %vm430_vm8, %v432_v37, -inf }
 0x1a8   : > { %v436_v40 = vmul.f32 1.442695, %v434_v38  ;;  %v409_v41 = vpop.xlane.xlu1 %408 }
 0x1a9   : > { %vm422_vm3 = vcmp.gt.f32.partialorder %v420_v39, %v409_v41  ;;  %vm460_vm4 = vcmp.lt.f32.partialorder %v409_v41, inf  ;;  %v411_v43 = vpop.xlane.xlu0 %410 }
 0x1aa   : > { %699 = vpow2.f32 %v436_v40  ;;  %vm1002_vm10 = vmand %vm460_vm4, %vm462_vm9  ;;  %vm423_vm12 = vcmp.gt.f32.partialorder %v421_v45, %v411_v43  ;;  %vm461_vm8 = vcmp.lt.f32.partialorder %v411_v43, inf  ;;  %vm366_vm4 = vcmp.lt.s32.totalorder %v941_v19, 32 }
 0x1ab   : > { %vm424_vm11 = vmand %vm944_vm7, %vm422_vm3  ;;  %vm365_vm7 = vcmp.lt.s32.totalorder %v936_v17, 32 }
 0x1ac   : > { %v417_v47 = vpop.xlane.xlu1 %416  ;;  %v448_v50 = vsel %vm424_vm11, %v446_v48, -inf  ;;  %vm425_vm0 = vmand %vm991_vm5, %vm423_vm12 }
 0x1ad   : > { %vm429_vm14 = vcmp.lt.f32.partialorder %v627_v46, %v417_v47  ;;  %v450_v54 = vmul.f32 1.442695, %v448_v50  ;;  %v449_v55 = vsel %vm425_vm0, %v447_v53, -inf }
 0x1ae   : > { %vm431_vm15 = vmand %vm405_vm2, %vm429_vm14  ;;  %v452_v57 = vmul.f32 1.442695, %v449_v55  ;;  %vm463_vm2 = vcmp.gt.f32.partialorder %v417_v47, -inf }
 0x1af   : > { %v435_v51 = vsel %vm431_vm15, %v433_v49, -inf  ;;  %vm465_vm9 = vmand %vm461_vm8, %vm463_vm2 }
 0x1b0   : > { %v438_v52 = vmul.f32 1.442695, %v435_v51 }
 0x1b2   : > { %701 = vpow2.f32 %v438_v52 }
 0x1b3   : > { %703 = vpow2.f32 %v450_v54 }
 0x1b4   : > { %v700_v56 = vpop.eup %699  ;;  %705 = vpow2.f32 %v452_v57 }
 0x1b5   : > { %440 = vadd.xlane.f32.xlu1 %v700_v56 }
 0x1bc   : > { %v702_v58 = vpop.eup %701 }
 0x1bd   : > { %442 = vadd.xlane.f32.xlu1 %v702_v58  ;;  %v704_v59 = vpop.eup %703 }
 0x1be   : > { %v706_v60 = vpop.eup %705 }
 0x1c1   : > { %454 = vadd.xlane.f32.xlu1 %v704_v59 }
 0x1c5   : > { %456 = vadd.xlane.f32.xlu1 %v706_v60 }
 0x242   : > { %v441_v61 = vpop.xlane.xlu1 %440 }
 0x243   : > { %v476_v62 = vadd.f32 1.0, %v441_v61  ;;  %vm466_vm13 = vcmp.gt.f32.partialorder %v441_v61, 0.0  ;;  %v479_v3 = vmul.f32 -0.5, %v441_v61  ;;  %v482_v10 = vand.u32 2147483647, %v441_v61 }
 0x245   : > { %707 = vlog2.f32 %v476_v62  ;;  %v480_v9 = vadd.f32 1.0, %v479_v3  ;;  %vm483_vm0 = vcmp.lt.f32.partialorder %v482_v10, 0.0004427343 }
 0x247   : > { %v481_v17 = vmul.f32 %v480_v9, %v441_v61 }
 0x24a   : > { %v443_v63 = vpop.xlane.xlu1 %442 }
 0x24b   : > { %v485_v0 = vadd.f32 1.0, %v443_v63  ;;  %vm467_vm11 = vcmp.gt.f32.partialorder %v443_v63, 0.0  ;;  %v488_v11 = vmul.f32 -0.5, %v443_v63  ;;  %v491_v22 = vand.u32 2147483647, %v443_v63 }
 0x24d   : > { %709 = vlog2.f32 %v485_v0  ;;  %v489_v19 = vadd.f32 1.0, %v488_v11 }
 0x24e   : > { %v455_v1 = vpop.xlane.xlu1 %454 }
 0x24f   : > { %vm468_vm1 = vcmp.gt.f32.partialorder %v455_v1, 0.0  ;;  %v496_v2 = vadd.f32 1.0, %v455_v1  ;;  %v708_v7 = vpop.eup %707  ;;  %v499_v8 = vmul.f32 -0.5, %v455_v1  ;;  %v502_v18 = vand.u32 2147483647, %v455_v1 }
 0x250   : > { %vm470_vm5 = vmand %vm466_vm13, %vm468_vm1  ;;  %v478_v13 = vmul.f32 0.6931472, %v708_v7  ;;  %v490_v28 = vmul.f32 %v489_v19, %v443_v63  ;;  %vm492_vm13 = vcmp.lt.f32.partialorder %v491_v22, 0.0004427343  ;;  %vm520_vm1 = vcmask 7168  }
 0x251   : > { %vm472_vm6 = vmand %vm1002_vm10, %vm470_vm5  ;;  %711 = vlog2.f32 %v496_v2  ;;  %v500_v14 = vadd.f32 1.0, %v499_v8 }
 0x252   : > { %vm1018_vm3 = vmand %vm472_vm6, %vm365_vm7  ;;  %v457_v5 = vpop.xlane.xlu1 %456  ;;  %v484_v21 = vsel %vm483_vm0, %v481_v17, %v478_v13  ;;  %vm503_vm7 = vcmp.lt.f32.partialorder %v502_v18, 0.0004427343 }
 0x253   : > { %vm469_vm12 = vcmp.gt.f32.partialorder %v457_v5, 0.0  ;;  %v505_v6 = vadd.f32 1.0, %v457_v5  ;;  %v508_v15 = vmul.f32 -0.5, %v457_v5  ;;  %v501_v25 = vmul.f32 %v500_v14, %v455_v1 }
 0x254   : > { %vm471_vm14 = vmand %vm467_vm11, %vm469_vm12  ;;  %v511_v27 = vand.u32 2147483647, %v457_v5  ;;  %v494_v31 = vmul.f32 0.5, %v484_v21 }
 0x255   : > { %vm473_vm15 = vmand %vm465_vm9, %vm471_vm14  ;;  %713 = vlog2.f32 %v505_v6  ;;  %v509_v26 = vadd.f32 1.0, %v508_v15 }
 0x256   : > { %vm1023_vm10 = vmand %vm473_vm15, %vm366_vm4  ;;  %vm512_vm2 = vcmp.lt.f32.partialorder %v511_v27, 0.0004427343 }
 0x257   : > { %v710_v16 = vpop.eup %709  ;;  %v510_v35 = vmul.f32 %v509_v26, %v457_v5 }
 0x258   : > { %v487_v23 = vmul.f32 0.6931472, %v710_v16 }
 0x25a   : > { %v493_v33 = vsel %vm492_vm13, %v490_v28, %v487_v23 }
 0x25b   : > { %v712_v20 = vpop.eup %711  ;;  %v495_v38 = vmul.f32 0.5, %v493_v33 }
 0x25c   : > { %v498_v24 = vmul.f32 0.6931472, %v712_v20 }
 0x25e   : > { %v504_v29 = vsel %vm503_vm7, %v501_v25, %v498_v24 }
 0x25f   : > { %v714_v30 = vpop.eup %713  ;;  %v514_v32 = vmul.f32 0.025, %v504_v29 }
 0x260   : > { %v507_v34 = vmul.f32 0.6931472, %v714_v30 }
 0x261   : > { %v516_v36 = vadd.f32 %v514_v32, %v494_v31 }
 0x262   : > { %v513_v37 = vsel %vm512_vm2, %v510_v35, %v507_v34 }
 0x263   : > { %v518_v39 = vsel %vm1018_vm3, %v516_v36, 0.0  ;;  %v515_v40 = vmul.f32 0.025, %v513_v37 }
 0x264   : > { %521 = vst.msk [vmem:[%s267_s14] sm:$0xff] %vm520_vm1, %v518_v39 }
 0x265   : > { %v517_v41 = vadd.f32 %v515_v40, %v495_v38 }
 0x267   : > { %v519_v42 = vsel %vm1023_vm10, %v517_v41, 0.0 }
 0x268   : > { %522 = vst.msk [vmem:[%s267_s14 + $0x8] sm:$0xff] %vm520_vm1, %v519_v42 }
 0x269 PF: > { %p15_p7 = scmp.ge.s32.totalorder %s840_s23, 4   ;;  %s1076_s18 = smov %s771_s19 }
 0x26a   : > { %s1077_s19 = smov %s775_s20  ;;  %s1078_s20 = smov %s850_s26 }
 0x26b   : > { %s1079_s21 = smov %s840_s23  ;;  %17 = sbr.rel (!%p15_p7) target bundleno = 3 (0x3), region = 83 }
 0x272   :  { %545 = vsyncpa [#allocation4], 1 }
 0x273   :  { %547 = vsyncpa [#allocation4 + $0x1], 1 }

</bundles_post_ra>
